<compile_context>
chip_gen: v5e
topology: v5e:2x2
jax: 0.10.0
libtpu: 0.0.40
codegen_flags: <defaults>
</compile_context>

<pallas_src>
import functools

import jax
import jax.numpy as jnp
from jax import lax
from jax.experimental import pallas as pl
from jax.experimental.pallas import tpu as pltpu

K = 3           # conv kernel size (3x3), stride 1, padding 1 -> "same"
K1_PAD = 32     # conv1 im2col contraction: 9 taps * 3 ch = 27, padded to 32 sublanes
K2_PAD = 16     # conv2 tap dim: 9 taps padded to 16 rows


def _depth_kernel(x_ref, w1_ref, w2_ref, b2_ref, o_ref, col_ref, *, H, W, HW):
    # x_ref  : (C_IN, T)    group of whole images, flattened spatial on lanes
    # w1_ref : (C_MID, 32)  conv1 weights: col 3*tap+c = w1[o,c,ky,kx]; col 27 = b1
    # w2_ref : (16, C_MID)  conv2 weights: row tap = w2[0,:,ky,kx]; rows 9..15 = 0
    # b2_ref : (1,)         SMEM scalar
    # o_ref  : (1, T)       lane-dense output
    # col_ref: (32, T)      VMEM im2col scratch
    T = x_ref.shape[-1]
    x = x_ref[...]                                    # (C_IN, T)

    # Boundary masks, built once: 2 row masks + 2 col masks, AND'ed per tap.
    pos = lax.broadcasted_iota(jnp.int32, (1, T), 1)
    phw = pos % HW                                    # offset within the image
    colp = pos % W                                    # column within the row
    row_ok = {-1: phw >= W, 0: None, 1: phw < HW - W}
    col_ok = {-1: colp >= 1, 0: None, 1: colp <= W - 2}

    def shifted(v, dy, dx):
        # v: (C, T) -> out[c, p] = v[c, p + dy*W + dx] if that pixel lies inside the
        # same image, else 0.  Wrapped lanes from the roll are always masked off.
        off = dy * W + dx
        if off != 0:
            v = pltpu.roll(v, shift=(-off) % T, axis=1)
        rm, cm = row_ok[dy], col_ok[dx]
        m = rm if cm is None else (cm if rm is None else rm & cm)
        if m is None:
            return v
        return jnp.where(m, v, 0.0)

    # ---- conv1: one K=27 (padded to 32) MXU matmul over an im2col slab -------------
    col_ref[pl.ds(28, 4), :] = jnp.zeros((4, T), jnp.float32)   # zero the pad rows
    col_ref[pl.ds(27, 1), :] = jnp.ones((1, T), jnp.float32)    # ones row -> bias col
    for t in range(K * K):                                      # NOTE(v5e): nine 3-row
        dy, dx = t // K - 1, t % K - 1                          # partial stores; batch
        col_ref[pl.ds(3 * t, 3), :] = shifted(x, dy, dx)        # them if vst binds.
    h = jnp.dot(w1_ref[...], col_ref[...],
                preferred_element_type=jnp.float32)             # (C_MID, T), bias incl.
    h = jnp.maximum(h, 0.0)                                     # ReLU

    # ---- conv2 (C_out == 1): channel-reduce first, then 9 cheap single-row taps ----
    g = jnp.dot(w2_ref[...], h, preferred_element_type=jnp.float32)  # (16, T); rows 0..8 used
    acc = jnp.full((1, T), b2_ref[0], jnp.float32)
    for t in range(K * K):
        dy, dx = t // K - 1, t % K - 1
        acc = acc + shifted(g[t:t + 1, :], dy, dx)
    o_ref[...] = acc.astype(o_ref.dtype)


def _choose_group(N, HW, max_lanes=64 * 1024):
    """Images per grid step: largest divisor G of N with a 128-aligned G*HW lane width
    under the lane budget, preferring >= 2 grid steps so both v7x TensorCores (and
    megacore sharding on v5e/v6e) get work."""
    cands = [g for g in range(1, N + 1)
             if N % g == 0 and (g * HW) % 128 == 0 and g * HW <= max_lanes]
    if not cands:
        return N            # single step; lane axis gets padded to 128 in the wrapper
    multi = [g for g in cands if N // g >= 2]
    return max(multi) if multi else max(cands)


def depth_estimation_forward(x_nchw, w1, b1, w2, b2):
    """x_nchw: (N, 3, H, W) f32.  w1: (16,3,3,3) OIHW, b1: (16,),
    w2: (1,16,3,3) OIHW, b2: (1,).  Returns (N, 1, H, W) f32."""
    N, c_in, H, W = x_nchw.shape
    c_mid = w1.shape[0]
    HW = H * W

    G = _choose_group(N, HW)
    steps = N // G
    T = G * HW
    lane_pad = (-T) % 128 if steps == 1 else 0
    T += lane_pad

    # Activations: (C, N*HW) so the flattened spatial(+batch) axis is lane-dense.
    x_cn = jnp.transpose(x_nchw, (1, 0, 2, 3)).reshape(c_in, N * HW).astype(jnp.float32)
    if lane_pad:
        x_cn = jnp.pad(x_cn, ((0, 0), (0, lane_pad)))

    # conv1 weights -> (C_MID, 32): col 3*tap+c = w1[o,c,ky,kx]; col 27 = b1; rest 0.
    w1m = jnp.transpose(w1, (0, 2, 3, 1)).reshape(c_mid, K * K * c_in).astype(jnp.float32)
    w1m = jnp.concatenate(
        [w1m, b1.reshape(c_mid, 1).astype(jnp.float32),
         jnp.zeros((c_mid, K1_PAD - K * K * c_in - 1), jnp.float32)], axis=1)
    # conv2 weights -> (16, C_MID): row tap = w2[0,:,ky,kx]; rows 9..15 = 0.
    w2m = jnp.transpose(w2, (2, 3, 1, 0)).reshape(K * K, c_mid).astype(jnp.float32)
    w2m = jnp.concatenate([w2m, jnp.zeros((K2_PAD - K * K, c_mid), jnp.float32)], axis=0)
    b2_r = b2.reshape(1).astype(jnp.float32)

    kernel = functools.partial(_depth_kernel, H=H, W=W, HW=HW)

    out_flat = pl.pallas_call(
        kernel,
        out_shape=jax.ShapeDtypeStruct((1, steps * T), jnp.float32),
        grid_spec=pltpu.PrefetchScalarGridSpec(
            num_scalar_prefetch=0,
            grid=(steps,),
            in_specs=[
                pl.BlockSpec((c_in, T), lambda i: (0, i)),
                pl.BlockSpec((c_mid, K1_PAD), lambda i: (0, 0)),
                pl.BlockSpec((K2_PAD, c_mid), lambda i: (0, 0)),
                pl.BlockSpec(memory_space=pltpu.MemorySpace.SMEM),
            ],
            out_specs=pl.BlockSpec((1, T), lambda i: (0, i)),
            scratch_shapes=[pltpu.VMEM((K1_PAD, T), jnp.float32)],
        ),
        compiler_params=pltpu.CompilerParams(
            dimension_semantics=("parallel",),
            vmem_limit_bytes=48 * 1024 * 1024,
        ),
    )(x_cn, w1m, w2m, b2_r)

    out = out_flat[:, :N * HW].reshape(1, N, HW)
    return jnp.transpose(out, (1, 0, 2)).reshape(N, 1, H, W)


def _reference_forward(x, w1, b1, w2, b2):
    dn = ("NCHW", "OIHW", "NCHW")
    y = jax.lax.conv_general_dilated(x, w1, (1, 1), "SAME", dimension_numbers=dn)
    y = jnp.maximum(y + b1.reshape(1, -1, 1, 1), 0.0)
    y = jax.lax.conv_general_dilated(y, w2, (1, 1), "SAME", dimension_numbers=dn)
    return y + b2.reshape(1, -1, 1, 1)


if __name__ == "__main__":
    key = jax.random.PRNGKey(0)
    kx, k1, kb1, k2, kb2 = jax.random.split(key, 5)

    # Small deterministic shapes consistent with the module's forward.
    N, C_IN, H, W = 2, 3, 16, 16
    C_MID, C_OUT = 16, 1

    x = jax.random.normal(kx, (N, C_IN, H, W), dtype=jnp.float32)
    # Deterministic synthetic parameters (PyTorch-like OIHW shapes).
    w1 = jax.random.normal(k1, (C_MID, C_IN, K, K), dtype=jnp.float32) * 0.1
    b1 = jax.random.normal(kb1, (C_MID,), dtype=jnp.float32) * 0.1
    w2 = jax.random.normal(k2, (C_OUT, C_MID, K, K), dtype=jnp.float32) * 0.1
    b2 = jax.random.normal(kb2, (C_OUT,), dtype=jnp.float32) * 0.1

    out = depth_estimation_forward(x, w1, b1, w2, b2)
    out = jax.block_until_ready(out)

    ref = jax.block_until_ready(_reference_forward(x, w1, b1, w2, b2))
    assert out.shape == (N, C_OUT, H, W), out.shape
    assert jnp.allclose(out, ref, atol=2e-4, rtol=2e-4), float(jnp.max(jnp.abs(out - ref)))

    print("KERNEL_OK")
</pallas_src>

<mosaic_0001>
module attributes {stable_mosaic.version = 11 : i64} {
  func.func @_depth_kernel(%arg0: i32, %arg1: memref<3x256xf32, #tpu.memory_space<vmem>>, %arg2: memref<16x32xf32, #tpu.memory_space<vmem>>, %arg3: memref<16x16xf32, #tpu.memory_space<vmem>>, %arg4: memref<1xf32, #tpu.memory_space<smem>>, %arg5: memref<1x256xf32, #tpu.memory_space<vmem>>, %arg6: memref<32x256xf32, #tpu.memory_space<vmem>>) attributes {dimension_semantics = [#tpu.dimension_semantics<parallel>], iteration_bounds = array<i64: 2>, scalar_prefetch = 0 : i64, scratch_operands = 1 : i64, tpu.core_type = #tpu.core_type<tc>, window_params = [{transform_indices = @transform_0, window_bounds = array<i64: 3, 256>}, {pipeline_mode = #tpu.pipeline_mode<synchronous>, transform_indices = @transform_1, window_bounds = array<i64: 16, 32>}, {pipeline_mode = #tpu.pipeline_mode<synchronous>, transform_indices = @transform_2, window_bounds = array<i64: 16, 16>}, {transform_indices = @transform_3, window_bounds = array<i64: 1>}, {transform_indices = @transform_4, window_bounds = array<i64: 1, 256>}]} {
    %c0 = arith.constant 0 : index
    %c0_0 = arith.constant 0 : index
    %0 = vector.load %arg1[%c0, %c0_0] : memref<3x256xf32, #tpu.memory_space<vmem>>, vector<3x256xf32>
    %1 = tpu.iota {dimensions = array<i32: 1>} : vector<1x256xi32>
    %c256_i32 = arith.constant 256 : i32
    %c0_i32 = arith.constant 0 : i32
    %2 = arith.cmpi eq, %c256_i32, %c0_i32 : i32
    %c1_i32 = arith.constant 1 : i32
    %3 = arith.select %2, %c1_i32, %c256_i32 : i32
    %4 = vector.broadcast %3 : i32 to vector<1x256xi32>
    %5 = arith.remsi %1, %4 : vector<1x256xi32>
    %c0_i32_1 = arith.constant 0 : i32
    %6 = vector.broadcast %c0_i32_1 : i32 to vector<1x256xi32>
    %7 = arith.cmpi ne, %5, %6 : vector<1x256xi32>
    %c0_i32_2 = arith.constant 0 : i32
    %8 = vector.broadcast %c0_i32_2 : i32 to vector<1x256xi32>
    %9 = arith.cmpi slt, %5, %8 : vector<1x256xi32>
    %c0_i32_3 = arith.constant 0 : i32
    %10 = arith.cmpi slt, %3, %c0_i32_3 : i32
    %11 = vector.broadcast %10 : i1 to vector<1x256xi1>
    %12 = vector.broadcast %11 : vector<1x256xi1> to vector<1x256xi1>
    %13 = arith.xori %9, %12 : vector<1x256xi1>
    %14 = arith.andi %13, %7 : vector<1x256xi1>
    %15 = vector.broadcast %3 : i32 to vector<1x256xi32>
    %16 = arith.addi %5, %15 : vector<1x256xi32>
    %17 = arith.select %14, %16, %5 : vector<1x256xi1>, vector<1x256xi32>
    %c16_i32 = arith.constant 16 : i32
    %c0_i32_4 = arith.constant 0 : i32
    %18 = arith.cmpi eq, %c16_i32, %c0_i32_4 : i32
    %c1_i32_5 = arith.constant 1 : i32
    %19 = arith.select %18, %c1_i32_5, %c16_i32 : i32
    %20 = vector.broadcast %19 : i32 to vector<1x256xi32>
    %21 = arith.remsi %1, %20 : vector<1x256xi32>
    %c0_i32_6 = arith.constant 0 : i32
    %22 = vector.broadcast %c0_i32_6 : i32 to vector<1x256xi32>
    %23 = arith.cmpi ne, %21, %22 : vector<1x256xi32>
    %c0_i32_7 = arith.constant 0 : i32
    %24 = vector.broadcast %c0_i32_7 : i32 to vector<1x256xi32>
    %25 = arith.cmpi slt, %21, %24 : vector<1x256xi32>
    %c0_i32_8 = arith.constant 0 : i32
    %26 = arith.cmpi slt, %19, %c0_i32_8 : i32
    %27 = vector.broadcast %26 : i1 to vector<1x256xi1>
    %28 = vector.broadcast %27 : vector<1x256xi1> to vector<1x256xi1>
    %29 = arith.xori %25, %28 : vector<1x256xi1>
    %30 = arith.andi %29, %23 : vector<1x256xi1>
    %31 = vector.broadcast %19 : i32 to vector<1x256xi32>
    %32 = arith.addi %21, %31 : vector<1x256xi32>
    %33 = arith.select %30, %32, %21 : vector<1x256xi1>, vector<1x256xi32>
    %c16_i32_9 = arith.constant 16 : i32
    %34 = vector.broadcast %c16_i32_9 : i32 to vector<1x256xi32>
    %35 = arith.cmpi sge, %17, %34 : vector<1x256xi32>
    %c240_i32 = arith.constant 240 : i32
    %36 = vector.broadcast %c240_i32 : i32 to vector<1x256xi32>
    %37 = arith.cmpi slt, %17, %36 : vector<1x256xi32>
    %c1_i32_10 = arith.constant 1 : i32
    %38 = vector.broadcast %c1_i32_10 : i32 to vector<1x256xi32>
    %39 = arith.cmpi sge, %33, %38 : vector<1x256xi32>
    %c14_i32 = arith.constant 14 : i32
    %40 = vector.broadcast %c14_i32 : i32 to vector<1x256xi32>
    %41 = arith.cmpi sle, %33, %40 : vector<1x256xi32>
    %cst = arith.constant 0.000000e+00 : f32
    %42 = vector.broadcast %cst : f32 to vector<4x256xf32>
    %c28 = arith.constant 28 : index
    %c0_11 = arith.constant 0 : index
    %43 = vector.load %arg6[%c28, %c0_11] : memref<32x256xf32, #tpu.memory_space<vmem>>, vector<4x256xf32>
    tpu.vector_store %arg6[%c28, %c0_11], %42 {strides = array<i32>} : memref<32x256xf32, #tpu.memory_space<vmem>>, vector<4x256xf32>,
    %cst_12 = arith.constant 1.000000e+00 : f32
    %44 = vector.broadcast %cst_12 : f32 to vector<1x256xf32>
    %c27 = arith.constant 27 : index
    %c0_13 = arith.constant 0 : index
    %45 = vector.load %arg6[%c27, %c0_13] : memref<32x256xf32, #tpu.memory_space<vmem>>, vector<1x256xf32>
    tpu.vector_store %arg6[%c27, %c0_13], %44 {strides = array<i32>} : memref<32x256xf32, #tpu.memory_space<vmem>>, vector<1x256xf32>,
    %c17_i32 = arith.constant 17 : i32
    %46 = tpu.dynamic_rotate %0 by %c17_i32 dim 1 : vector<3x256xf32>, i32 -> vector<3x256xf32>
    %47 = arith.andi %35, %39 : vector<1x256xi1>
    %cst_14 = arith.constant 0.000000e+00 : f32
    %48 = vector.shape_cast %47 : vector<1x256xi1> to vector<1x256xi1>
    %49 = vector.broadcast %48 : vector<1x256xi1> to vector<3x256xi1>
    %50 = vector.broadcast %cst_14 : f32 to vector<3x256xf32>
    %51 = arith.select %49, %46, %50 : vector<3x256xi1>, vector<3x256xf32>
    %c0_15 = arith.constant 0 : index
    %c0_16 = arith.constant 0 : index
    %52 = vector.load %arg6[%c0_15, %c0_16] : memref<32x256xf32, #tpu.memory_space<vmem>>, vector<3x256xf32>
    tpu.vector_store %arg6[%c0_15, %c0_16], %51 {strides = array<i32>} : memref<32x256xf32, #tpu.memory_space<vmem>>, vector<3x256xf32>,
    %c16_i32_17 = arith.constant 16 : i32
    %53 = tpu.dynamic_rotate %0 by %c16_i32_17 dim 1 : vector<3x256xf32>, i32 -> vector<3x256xf32>
    %cst_18 = arith.constant 0.000000e+00 : f32
    %54 = vector.shape_cast %35 : vector<1x256xi1> to vector<1x256xi1>
    %55 = vector.broadcast %54 : vector<1x256xi1> to vector<3x256xi1>
    %56 = vector.broadcast %cst_18 : f32 to vector<3x256xf32>
    %57 = arith.select %55, %53, %56 : vector<3x256xi1>, vector<3x256xf32>
    %c3 = arith.constant 3 : index
    %c0_19 = arith.constant 0 : index
    %58 = vector.load %arg6[%c3, %c0_19] : memref<32x256xf32, #tpu.memory_space<vmem>>, vector<3x256xf32>
    tpu.vector_store %arg6[%c3, %c0_19], %57 {strides = array<i32>} : memref<32x256xf32, #tpu.memory_space<vmem>>, vector<3x256xf32>,
    %c15_i32 = arith.constant 15 : i32
    %59 = tpu.dynamic_rotate %0 by %c15_i32 dim 1 : vector<3x256xf32>, i32 -> vector<3x256xf32>
    %60 = arith.andi %35, %41 : vector<1x256xi1>
    %cst_20 = arith.constant 0.000000e+00 : f32
    %61 = vector.shape_cast %60 : vector<1x256xi1> to vector<1x256xi1>
    %62 = vector.broadcast %61 : vector<1x256xi1> to vector<3x256xi1>
    %63 = vector.broadcast %cst_20 : f32 to vector<3x256xf32>
    %64 = arith.select %62, %59, %63 : vector<3x256xi1>, vector<3x256xf32>
    %c6 = arith.constant 6 : index
    %c0_21 = arith.constant 0 : index
    %65 = vector.load %arg6[%c6, %c0_21] : memref<32x256xf32, #tpu.memory_space<vmem>>, vector<3x256xf32>
    tpu.vector_store %arg6[%c6, %c0_21], %64 {strides = array<i32>} : memref<32x256xf32, #tpu.memory_space<vmem>>, vector<3x256xf32>,
    %c1_i32_22 = arith.constant 1 : i32
    %66 = tpu.dynamic_rotate %0 by %c1_i32_22 dim 1 : vector<3x256xf32>, i32 -> vector<3x256xf32>
    %cst_23 = arith.constant 0.000000e+00 : f32
    %67 = vector.shape_cast %39 : vector<1x256xi1> to vector<1x256xi1>
    %68 = vector.broadcast %67 : vector<1x256xi1> to vector<3x256xi1>
    %69 = vector.broadcast %cst_23 : f32 to vector<3x256xf32>
    %70 = arith.select %68, %66, %69 : vector<3x256xi1>, vector<3x256xf32>
    %c9 = arith.constant 9 : index
    %c0_24 = arith.constant 0 : index
    %71 = vector.load %arg6[%c9, %c0_24] : memref<32x256xf32, #tpu.memory_space<vmem>>, vector<3x256xf32>
    tpu.vector_store %arg6[%c9, %c0_24], %70 {strides = array<i32>} : memref<32x256xf32, #tpu.memory_space<vmem>>, vector<3x256xf32>,
    %c12 = arith.constant 12 : index
    %c0_25 = arith.constant 0 : index
    %72 = vector.load %arg6[%c12, %c0_25] : memref<32x256xf32, #tpu.memory_space<vmem>>, vector<3x256xf32>
    tpu.vector_store %arg6[%c12, %c0_25], %0 {strides = array<i32>} : memref<32x256xf32, #tpu.memory_space<vmem>>, vector<3x256xf32>,
    %c255_i32 = arith.constant 255 : i32
    %73 = tpu.dynamic_rotate %0 by %c255_i32 dim 1 : vector<3x256xf32>, i32 -> vector<3x256xf32>
    %cst_26 = arith.constant 0.000000e+00 : f32
    %74 = vector.shape_cast %41 : vector<1x256xi1> to vector<1x256xi1>
    %75 = vector.broadcast %74 : vector<1x256xi1> to vector<3x256xi1>
    %76 = vector.broadcast %cst_26 : f32 to vector<3x256xf32>
    %77 = arith.select %75, %73, %76 : vector<3x256xi1>, vector<3x256xf32>
    %c15 = arith.constant 15 : index
    %c0_27 = arith.constant 0 : index
    %78 = vector.load %arg6[%c15, %c0_27] : memref<32x256xf32, #tpu.memory_space<vmem>>, vector<3x256xf32>
    tpu.vector_store %arg6[%c15, %c0_27], %77 {strides = array<i32>} : memref<32x256xf32, #tpu.memory_space<vmem>>, vector<3x256xf32>,
    %c241_i32 = arith.constant 241 : i32
    %79 = tpu.dynamic_rotate %0 by %c241_i32 dim 1 : vector<3x256xf32>, i32 -> vector<3x256xf32>
    %80 = arith.andi %37, %39 : vector<1x256xi1>
    %cst_28 = arith.constant 0.000000e+00 : f32
    %81 = vector.shape_cast %80 : vector<1x256xi1> to vector<1x256xi1>
    %82 = vector.broadcast %81 : vector<1x256xi1> to vector<3x256xi1>
    %83 = vector.broadcast %cst_28 : f32 to vector<3x256xf32>
    %84 = arith.select %82, %79, %83 : vector<3x256xi1>, vector<3x256xf32>
    %c18 = arith.constant 18 : index
    %c0_29 = arith.constant 0 : index
    %85 = vector.load %arg6[%c18, %c0_29] : memref<32x256xf32, #tpu.memory_space<vmem>>, vector<3x256xf32>
    tpu.vector_store %arg6[%c18, %c0_29], %84 {strides = array<i32>} : memref<32x256xf32, #tpu.memory_space<vmem>>, vector<3x256xf32>,
    %c240_i32_30 = arith.constant 240 : i32
    %86 = tpu.dynamic_rotate %0 by %c240_i32_30 dim 1 : vector<3x256xf32>, i32 -> vector<3x256xf32>
    %cst_31 = arith.constant 0.000000e+00 : f32
    %87 = vector.shape_cast %37 : vector<1x256xi1> to vector<1x256xi1>
    %88 = vector.broadcast %87 : vector<1x256xi1> to vector<3x256xi1>
    %89 = vector.broadcast %cst_31 : f32 to vector<3x256xf32>
    %90 = arith.select %88, %86, %89 : vector<3x256xi1>, vector<3x256xf32>
    %c21 = arith.constant 21 : index
    %c0_32 = arith.constant 0 : index
    %91 = vector.load %arg6[%c21, %c0_32] : memref<32x256xf32, #tpu.memory_space<vmem>>, vector<3x256xf32>
    tpu.vector_store %arg6[%c21, %c0_32], %90 {strides = array<i32>} : memref<32x256xf32, #tpu.memory_space<vmem>>, vector<3x256xf32>,
    %c239_i32 = arith.constant 239 : i32
    %92 = tpu.dynamic_rotate %0 by %c239_i32 dim 1 : vector<3x256xf32>, i32 -> vector<3x256xf32>
    %93 = arith.andi %37, %41 : vector<1x256xi1>
    %cst_33 = arith.constant 0.000000e+00 : f32
    %94 = vector.shape_cast %93 : vector<1x256xi1> to vector<1x256xi1>
    %95 = vector.broadcast %94 : vector<1x256xi1> to vector<3x256xi1>
    %96 = vector.broadcast %cst_33 : f32 to vector<3x256xf32>
    %97 = arith.select %95, %92, %96 : vector<3x256xi1>, vector<3x256xf32>
    %c24 = arith.constant 24 : index
    %c0_34 = arith.constant 0 : index
    %98 = vector.load %arg6[%c24, %c0_34] : memref<32x256xf32, #tpu.memory_space<vmem>>, vector<3x256xf32>
    tpu.vector_store %arg6[%c24, %c0_34], %97 {strides = array<i32>} : memref<32x256xf32, #tpu.memory_space<vmem>>, vector<3x256xf32>,
    %c0_35 = arith.constant 0 : index
    %c0_36 = arith.constant 0 : index
    %99 = vector.load %arg2[%c0_35, %c0_36] : memref<16x32xf32, #tpu.memory_space<vmem>>, vector<16x32xf32>
    %c0_37 = arith.constant 0 : index
    %c0_38 = arith.constant 0 : index
    %100 = vector.load %arg6[%c0_37, %c0_38] : memref<32x256xf32, #tpu.memory_space<vmem>>, vector<32x256xf32>
    %cst_39 = arith.constant dense<0.000000e+00> : vector<16x256xf32>
    %101 = tpu.matmul %99, %100, %cst_39 {dimension_numbers = #tpu.dot_dimension_numbers<[1], [0], [0], [1], [0, 0, 1, 1], [], []>} : vector<16x32xf32>, vector<32x256xf32>, vector<16x256xf32> -> vector<16x256xf32>
    %cst_40 = arith.constant 0.000000e+00 : f32
    %102 = vector.broadcast %cst_40 : f32 to vector<16x256xf32>
    %103 = arith.maximumf %101, %102 : vector<16x256xf32>
    %c0_41 = arith.constant 0 : index
    %c0_42 = arith.constant 0 : index
    %104 = vector.load %arg3[%c0_41, %c0_42] : memref<16x16xf32, #tpu.memory_space<vmem>>, vector<16x16xf32>
    %cst_43 = arith.constant dense<0.000000e+00> : vector<16x256xf32>
    %105 = tpu.matmul %104, %103, %cst_43 {dimension_numbers = #tpu.dot_dimension_numbers<[1], [0], [0], [1], [0, 0, 1, 1], [], []>} : vector<16x16xf32>, vector<16x256xf32>, vector<16x256xf32> -> vector<16x256xf32>
    %c0_44 = arith.constant 0 : index
    %106 = memref.load %arg4[%c0_44] : memref<1xf32, #tpu.memory_space<smem>>
    %107 = vector.broadcast %106 : f32 to vector<1x256xf32>
    %108 = vector.extract_strided_slice %105 {offsets = [0, 0], sizes = [1, 256], strides = [1, 1]} : vector<16x256xf32> to vector<1x256xf32>
    %c17_i32_45 = arith.constant 17 : i32
    %109 = tpu.dynamic_rotate %108 by %c17_i32_45 dim 1 : vector<1x256xf32>, i32 -> vector<1x256xf32>
    %110 = arith.andi %35, %39 : vector<1x256xi1>
    %cst_46 = arith.constant 0.000000e+00 : f32
    %111 = vector.broadcast %cst_46 : f32 to vector<1x256xf32>
    %112 = arith.select %110, %109, %111 : vector<1x256xi1>, vector<1x256xf32>
    %113 = arith.addf %107, %112 : vector<1x256xf32>
    %114 = vector.extract_strided_slice %105 {offsets = [1, 0], sizes = [1, 256], strides = [1, 1]} : vector<16x256xf32> to vector<1x256xf32>
    %c16_i32_47 = arith.constant 16 : i32
    %115 = tpu.dynamic_rotate %114 by %c16_i32_47 dim 1 : vector<1x256xf32>, i32 -> vector<1x256xf32>
    %cst_48 = arith.constant 0.000000e+00 : f32
    %116 = vector.broadcast %cst_48 : f32 to vector<1x256xf32>
    %117 = arith.select %35, %115, %116 : vector<1x256xi1>, vector<1x256xf32>
    %118 = arith.addf %113, %117 : vector<1x256xf32>
    %119 = vector.extract_strided_slice %105 {offsets = [2, 0], sizes = [1, 256], strides = [1, 1]} : vector<16x256xf32> to vector<1x256xf32>
    %c15_i32_49 = arith.constant 15 : i32
    %120 = tpu.dynamic_rotate %119 by %c15_i32_49 dim 1 : vector<1x256xf32>, i32 -> vector<1x256xf32>
    %121 = arith.andi %35, %41 : vector<1x256xi1>
    %cst_50 = arith.constant 0.000000e+00 : f32
    %122 = vector.broadcast %cst_50 : f32 to vector<1x256xf32>
    %123 = arith.select %121, %120, %122 : vector<1x256xi1>, vector<1x256xf32>
    %124 = arith.addf %118, %123 : vector<1x256xf32>
    %125 = vector.extract_strided_slice %105 {offsets = [3, 0], sizes = [1, 256], strides = [1, 1]} : vector<16x256xf32> to vector<1x256xf32>
    %c1_i32_51 = arith.constant 1 : i32
    %126 = tpu.dynamic_rotate %125 by %c1_i32_51 dim 1 : vector<1x256xf32>, i32 -> vector<1x256xf32>
    %cst_52 = arith.constant 0.000000e+00 : f32
    %127 = vector.broadcast %cst_52 : f32 to vector<1x256xf32>
    %128 = arith.select %39, %126, %127 : vector<1x256xi1>, vector<1x256xf32>
    %129 = arith.addf %124, %128 : vector<1x256xf32>
    %130 = vector.extract_strided_slice %105 {offsets = [4, 0], sizes = [1, 256], strides = [1, 1]} : vector<16x256xf32> to vector<1x256xf32>
    %131 = arith.addf %129, %130 : vector<1x256xf32>
    %132 = vector.extract_strided_slice %105 {offsets = [5, 0], sizes = [1, 256], strides = [1, 1]} : vector<16x256xf32> to vector<1x256xf32>
    %c255_i32_53 = arith.constant 255 : i32
    %133 = tpu.dynamic_rotate %132 by %c255_i32_53 dim 1 : vector<1x256xf32>, i32 -> vector<1x256xf32>
    %cst_54 = arith.constant 0.000000e+00 : f32
    %134 = vector.broadcast %cst_54 : f32 to vector<1x256xf32>
    %135 = arith.select %41, %133, %134 : vector<1x256xi1>, vector<1x256xf32>
    %136 = arith.addf %131, %135 : vector<1x256xf32>
    %137 = vector.extract_strided_slice %105 {offsets = [6, 0], sizes = [1, 256], strides = [1, 1]} : vector<16x256xf32> to vector<1x256xf32>
    %c241_i32_55 = arith.constant 241 : i32
    %138 = tpu.dynamic_rotate %137 by %c241_i32_55 dim 1 : vector<1x256xf32>, i32 -> vector<1x256xf32>
    %139 = arith.andi %37, %39 : vector<1x256xi1>
    %cst_56 = arith.constant 0.000000e+00 : f32
    %140 = vector.broadcast %cst_56 : f32 to vector<1x256xf32>
    %141 = arith.select %139, %138, %140 : vector<1x256xi1>, vector<1x256xf32>
    %142 = arith.addf %136, %141 : vector<1x256xf32>
    %143 = vector.extract_strided_slice %105 {offsets = [7, 0], sizes = [1, 256], strides = [1, 1]} : vector<16x256xf32> to vector<1x256xf32>
    %c240_i32_57 = arith.constant 240 : i32
    %144 = tpu.dynamic_rotate %143 by %c240_i32_57 dim 1 : vector<1x256xf32>, i32 -> vector<1x256xf32>
    %cst_58 = arith.constant 0.000000e+00 : f32
    %145 = vector.broadcast %cst_58 : f32 to vector<1x256xf32>
    %146 = arith.select %37, %144, %145 : vector<1x256xi1>, vector<1x256xf32>
    %147 = arith.addf %142, %146 : vector<1x256xf32>
    %148 = vector.extract_strided_slice %105 {offsets = [8, 0], sizes = [1, 256], strides = [1, 1]} : vector<16x256xf32> to vector<1x256xf32>
    %c239_i32_59 = arith.constant 239 : i32
    %149 = tpu.dynamic_rotate %148 by %c239_i32_59 dim 1 : vector<1x256xf32>, i32 -> vector<1x256xf32>
    %150 = arith.andi %37, %41 : vector<1x256xi1>
    %cst_60 = arith.constant 0.000000e+00 : f32
    %151 = vector.broadcast %cst_60 : f32 to vector<1x256xf32>
    %152 = arith.select %150, %149, %151 : vector<1x256xi1>, vector<1x256xf32>
    %153 = arith.addf %147, %152 : vector<1x256xf32>
    %c0_61 = arith.constant 0 : index
    %c0_62 = arith.constant 0 : index
    %154 = vector.load %arg5[%c0_61, %c0_62] : memref<1x256xf32, #tpu.memory_space<vmem>>, vector<1x256xf32>
    tpu.vector_store %arg5[%c0_61, %c0_62], %153 {strides = array<i32>} : memref<1x256xf32, #tpu.memory_space<vmem>>, vector<1x256xf32>,
    return
  }
  func.func @transform_0(%arg0: i32) -> (i32, i32) {
    %c0_i32 = arith.constant 0 : i32
    %c0_i32_0 = arith.constant 0 : i32
    return %c0_i32, %arg0 : i32, i32
  }
  func.func @transform_1(%arg0: i32) -> (i32, i32) {
    %c0_i32 = arith.constant 0 : i32
    %c0_i32_0 = arith.constant 0 : i32
    %c0_i32_1 = arith.constant 0 : i32
    return %c0_i32, %c0_i32_0 : i32, i32
  }
  func.func @transform_2(%arg0: i32) -> (i32, i32) {
    %c0_i32 = arith.constant 0 : i32
    %c0_i32_0 = arith.constant 0 : i32
    %c0_i32_1 = arith.constant 0 : i32
    return %c0_i32, %c0_i32_0 : i32, i32
  }
  func.func @transform_3(%arg0: i32) -> i32 {
    %c0_i32 = arith.constant 0 : i32
    %c0_i32_0 = arith.constant 0 : i32
    return %c0_i32 : i32
  }
  func.func @transform_4(%arg0: i32) -> (i32, i32) {
    %c0_i32 = arith.constant 0 : i32
    %c0_i32_0 = arith.constant 0 : i32
    return %c0_i32, %arg0 : i32, i32
  }
}

</mosaic_0001>

<bundles_post_ra>
// kernel: tpu_custom_call.1
= control target key start
LH: loop header
LB: loop body
LE: loop exit
PB: predicated region body
PF: predicated region fallthrough
CT: control target
= control target key end

     0   :  { %s1602_s0 = inlined_call_operand.hbm [shape: f32[3,512], index: 0, kind: input, shape index: {}]   ;;  %s1603_s1 = inlined_call_operand.hbm [shape: f32[16,32], index: 1, kind: input, shape index: {}]   ;;  %s1604_s2 = inlined_call_operand.hbm [shape: f32[16,16], index: 2, kind: input, shape index: {}]   ;;  %s1605_s3 = inlined_call_operand.<no memory space> [shape: f32[1], index: 3, kind: input, shape index: {}]   ;;  %s1606_s4 = inlined_call_operand.hbm [shape: f32[1,512], index: 4, kind: output, shape index: {}]  }
   0x1   :  { %9 = sst [smem:[#allocation3]] %s1605_s3 }
   0x2   :  { %10 = vsyncpa [#allocation5], 0 }
   0x3   :  { %12 = vsyncpa [#allocation5 + $0x1], 0 }
   0x4   :  { %13 = vsyncpa [#allocation8], 0 }
   0x5   :  { %14 = vsyncpa [#allocation6], 0 }
   0x6   :  { %16 = vsyncpa [#allocation6 + $0x1], 0  ;;  %s1195_s17 = smov 0   ;;  %s1197_s18 = smov 0  }
   0x7   :  { %s1199_s19 = smov 0   ;;  %s1201_s20 = smov 0  }
   0x8 LB: > { %s153_s22 = sshll.u32 %s1603_s1, 4  ;;  %s1219_s23 = sadd.s32 4294967295, %s1151_s20   ;;  %s1151_s20 = sphi %s1201_s20, %s1644_s20   ;;  %s1147_s19 = sphi %s1199_s19, %s1643_s19   ;;  %s1143_s18 = sphi %s1197_s18, %s1642_s18   ;;  %s1139_s17 = sphi %s1195_s17, %s1641_s17   ;;  %s154_s22 = int_to_ptr.hbm [resolvable:$true] %s153_s22 }
   0x9   : > { %p887_p0 = scmp.ge.s32.totalorder %s1151_s20, 1  ;;  %p43_p1 = scmp.eq.s32.totalorder %s1219_s23, 0 }
   0xa   : > { %p142_p2 = scmp.lt.s32.totalorder %s1151_s20, 3  ;;  %s1153_s25 = smov [#allocation7]  }
   0xb   : > { %s155_s26 = sshll.u32 %s1153_s25, 4  ;;  %s167_s29 = sshll.u32 %s1604_s2, 4  ;;  %s156_s26 = int_to_ptr.vmem [resolvable:$true] %s155_s26  ;;  %s168_s29 = int_to_ptr.hbm [resolvable:$true] %s167_s29 }
   0xc   : > { %p1224_p3 = pnand %p887_p0, %p142_p2  ;;  %s1154_s30 = smov [#allocation9]  }
   0xd   : > { %s169_s5 = sshll.u32 %s1154_s30, 4  ;;  %s1155_s6 = smov 128   ;;  %s170_s5 = int_to_ptr.vmem [resolvable:$true] %s169_s5 }
   0xe   : > { %p924_p4 = pneg %p1224_p3  ;;  %s1156_s7 = smov 8  }
   0xf   : > { %s886_s8 = sadd.s32 4294967294, %s1151_s20   ;;  %s1238_s9 = sadd.s32 1, %s1151_s20  }
  0x10   : > { %p925_p6 = pnand %p924_p4, %p43_p1  ;;  %s26_s10 = ssub.s32 %s1151_s20, %s1238_s9 }
  0x11   : > { %s29_s11 = sadd.s32 1, %s1147_s19  ;;  %p27_p7 = scmp.eq.s32.totalorder %s26_s10, 0 }
  0x12   : > { %927 = dma.hbm_to_vmem [thread:$0]  (!%p925_p6), %s154_s22, 256, %s156_s26, [#allocation8], %s1155_s6, %s1155_s6, %s1156_s7  }
  0x13   : > { %930 = dma.hbm_to_vmem [thread:$0]  (!%p925_p6), %s168_s29, 256, %s170_s5, [#allocation8], %s1155_s6, %s1155_s6, %s1156_s7  }
  0x14   : > { %p36_p8 = scmp.ne.s32.totalorder %s1147_s19, %s1143_s18  ;;  %p37_p9 = scmp.eq.s32.totalorder %s1151_s20, 0 }
  0x15   : > { %p42_p10 = scmp.ne.s32.totalorder %s1143_s18, %s1139_s17  ;;  %p129_p13 = scmp.eq.s32.totalorder %s1219_s23, 1 }
  0x16   : > { %s1249_s12 = scalar_select %p27_p7, %s1147_s19, %s29_s11  }
  0x17   : > { %p1251_p11 = por %p37_p9, %p36_p8  ;;  %p1257_p12 = por %p43_p1, %p42_p10 }
  0x18   : > { %p135_p0 = scmp.eq.s32.totalorder %s886_s8, 1  ;;  %p941_p2 = scmp.lt.s32.totalorder %s1151_s20, 2 }
  0x19   : > { %s186_s15 = sand.u32 1, %s1147_s19   ;;  %p1264_p4 = por %p129_p13, %p36_p8 }
  0x1a   : > { %p1268_p6 = por %p135_p0, %p42_p10  ;;  %s891_s21 = sshll.u32 %s186_s15, 3 }
  0x1b   : > { %s911_s22 = sshll.u32 %s1151_s20, 3  ;;  %s190_s28 = scalar_lea.vmem [#allocation4], %s891_s21 }
  0x1c   : > { %s195_s27 = scalar_lea.hbm %s1602_s0, %s911_s22  ;;  %s199_s29 = sshll.u32 %s190_s28, 4  ;;  %s200_s29 = int_to_ptr.vmem [resolvable:$true] %s199_s29 }
  0x1d   : > { %s197_s30 = sshll.u32 %s195_s27, 4  ;;  %p1278_p7 = pnand %p941_p2, %p1251_p11  ;;  %s198_s30 = int_to_ptr.hbm [resolvable:$true] %s197_s30 }
  0x1e   : > { %s187_s6 = scalar_lea.sflag [#allocation5], %s186_s15  ;;  %s1051_s7 = sshra.s32 %s198_s30, 4  ;;  %s1052_s7 = int_to_ptr.hbm [resolvable:$true] %s1051_s7 }
  0x1f   : > { %s1053_s8 = scalar_lea.hbm %s1052_s7, 8  ;;  %p1055_p9 = pneg %p1278_p7 }
  0x20   : > { %p1054_p8 = scmp.ne.s32.totalorder %s1052_s7, %s1053_s8  ;;  %s1058_s21 = scalar_lea.hbm %s1602_s0, 16 }
  0x21   : > { %p1059_p11 = scmp.lt.s32.totalorder %s1052_s7, %s1602_s0  ;;  %p1060_p0 = scmp.lt.s32.totalorder %s1058_s21, %s1053_s8 }
  0x22   : > { %p1056_p10 = pnand %p1055_p9, %p1054_p8 }
  0x23   : > { %p1061_p2 = por %p1060_p0, %p1059_p11 }
  0x24   : > { %p1057_p13 = pneg %p1056_p10 }
  0x26   : > { %p1062_p5 = pnand %p1061_p2, %p1057_p13 }
  0x28   : > { %1065 = shalt.err (!%p1062_p5)
}
  0x29   : > { %934 = dma.hbm_to_vmem [thread:$0]  (!%p1278_p7), %s198_s30, 128, %s200_s29, %s187_s6  }
  0x2a   : > { %208 = sbr.rel (%p1224_p3) target bundleno = 697 (0x2b9), region = 36  ;;  %s1295_s15 = sand.u32 (!%p1224_p3), 1, %s1143_s18  }
  0x2b   : > { %s895_s25 = sshll.u32 (!%p1224_p3), %s1295_s15, 3  ;;  %s211_s26 = scalar_lea.sflag (!%p1224_p3), [#allocation5], %s1295_s15 }
  0x2c   : > { %s214_s27 = scalar_lea.vmem (!%p1224_p3), [#allocation4], %s895_s25 }
  0x2f   : > { %1126 = dma.done.wait (%p1257_p12), %s211_s26, 128  }
  0x30   : > { %1128 = vsyncadd (%p1257_p12), %s211_s26, 4294967168 }
  0x31   : > { %1130 = dma.done.wait (%p43_p1), [#allocation8], 512  }
  0x32   : > { %1132 = vsyncadd (%p43_p1), [#allocation8], 4294966784  ;;  %v252_v0 = vld [vmem:[%s214_s27] sm:$0x77]  ;;  %s1157_s24 = smov 16   ;;  %s1158_s14 = smov 15   ;;  %v253_v19 = vlaneseq }
  0x33   : > { %322 = vst [vmem:[#allocation1] ss:$2 sm:$0xff] %v252_v0  ;;  %s1159_s28 = smov 1   ;;  %s1160_s29 = smov 127   ;;  %v1165_v50 = vmov 0.0   ;;  %v1166_v51 = vmov 1.0  }
  0x34   : > { %s1161_s30 = smov 113   ;;  %s1162_s5 = smov 112   ;;  %v1323_v20 = vand.u32 127, %v253_v19  ;;  %vm1375_vm8 = vcmp.lt.s32.totalorder %v253_v19, 256  ;;  %312 = vst [vmem:[#allocation2 + $0x30] sm:$0xf0] %v1165_v50 }
  0x35   : > { %s1163_s6 = smov 111   ;;  %s1164_s7 = smov 17   ;;  %319 = vst.msk [vmem:[#allocation2 + $0x33] ss:$8 sm:$0x3] %vm1375_vm8, %v1166_v51 }
  0x36   : > { %v260_v22 = vand.u32 255, %v1323_v20  ;;  %v284_v23 = vand.u32 15, %v1323_v20  ;;  %v255_v24 = vadd.s32 128, %v1323_v20  ;;  %vm379_vm2 = vcmp.lt.s32.totalorder %v1323_v20, 15  ;;  %313 = vst [vmem:[#allocation2 + $0x38] sm:$0xf0] %v1165_v50 }
  0x37   : > { %vm409_vm5 = vcmp.lt.s32.totalorder %v1323_v20, 1  ;;  %vm1608_vm9 = vcmp.lt.s32.totalorder %v1323_v20, 112  ;;  %vm443_vm11 = vcmp.lt.s32.totalorder %v1323_v20, 127  ;;  %vm1611_vm12 = vcmp.lt.s32.totalorder %v1323_v20, 113  ;;  %s660_s8 = sld [smem:[#allocation3]]  ;;  %s898_s10 = sshll.u32 %s1295_s15, 1 }
  0x38   : > { %vm1330_vm0 = vcmp.ge.s32.totalorder %v260_v22, 16  ;;  %vm1334_vm1 = vcmp.le.s32.totalorder %v284_v23, 14  ;;  %v291_v28 = vand.u32 15, %v255_v24  ;;  %vm1359_vm6 = vcmp.ge.s32.totalorder %v284_v23, 1  ;;  %s908_s11 = sshll.u32 %s1219_s23, 1  ;;  %s249_s23 = scalar_lea.vmem [#allocation10], %s898_s10 }
  0x39   : > { %vm382_vm4 = vmand %vm1330_vm0, %vm1334_vm1  ;;  %v267_v48 = vand.u32 255, %v255_v24  ;;  %vm1609_vm14 = vcmp.lt.s32.totalorder %v1323_v20, 111  ;;  %s792_s13 = scalar_lea.hbm %s1606_s4, %s908_s11  ;;  %s794_s25 = sshll.u32 %s249_s23, 4  ;;  %s795_s25 = int_to_ptr.vmem [resolvable:$true] %s794_s25 }
  0x3a   : > { %v323_v1 = vld.sshfl [vmem:[#allocation1] sm:$0xff pattern:$0x75316420]  ;;  %v324_v2 = vld.sshfl [vmem:[#allocation1 + $0x8] sm:$0xff pattern:$0x75316420] }
  0x3b   : > { %344 = vst [vmem:[#allocation1] ss:$2 sm:$0xff] %v252_v0  ;;  %vm1339_vm3 = vcmp.le.s32.totalorder %v291_v28, 14  ;;  %vm1363_vm7 = vcmp.ge.s32.totalorder %v291_v28, 1  ;;  %vm1382_vm10 = vcmp.lt.s32.totalorder %v267_v48, 240  ;;  %s796_s26 = sshll.u32 %s792_s13, 4  ;;  %s797_s26 = int_to_ptr.hbm [resolvable:$true] %s796_s26 }
  0x3c   : > { %vm1607_vm13 = vmand %vm1382_vm10, %vm1363_vm7  ;;  %s782_s27 = scalar_lea.sflag [#allocation6], %s1295_s15 }
  0x3d   : > { %vm1610_vm15 = vmand %vm1382_vm10, %vm1339_vm3 }
  0x42   : > { %v345_v3 = vld.sshfl [vmem:[#allocation1] sm:$0xff pattern:$0x75316420]  ;;  %v346_v4 = vld.sshfl [vmem:[#allocation1 + $0x8] sm:$0xff pattern:$0x75316420] }
  0x43   : > { %349 = vrot.lane.b32.xlu0 %v345_v3, %s1157_s24  ;;  %370 = vst [vmem:[#allocation1] ss:$2 sm:$0xff] %v252_v0 }
  0x4a   : > { %v372_v5 = vld.sshfl [vmem:[#allocation1 + $0x8] sm:$0xff pattern:$0x75316420]  ;;  %v371_v6 = vld.sshfl [vmem:[#allocation1] sm:$0xff pattern:$0x75316420] }
  0x4b   : > { %377 = vrot.lane.b32.xlu0 %v372_v5, %s1158_s14  ;;  %400 = vst [vmem:[#allocation1] ss:$2 sm:$0xff] %v252_v0  ;;  %375 = vrot.lane.b32.xlu2 %v371_v6, %s1158_s14 }
  0x52   : > { %v401_v7 = vld.sshfl [vmem:[#allocation1] sm:$0xff pattern:$0x75316420]  ;;  %v402_v8 = vld.sshfl [vmem:[#allocation1 + $0x8] sm:$0xff pattern:$0x75316420] }
  0x53   : > { %405 = vrot.lane.b32.xlu1 %v401_v7, %s1159_s28  ;;  %427 = vst [vmem:[#allocation1 + $0x1] ss:$2 sm:$0xff] %v252_v0  ;;  %407 = vrot.lane.b32.xlu2 %v402_v8, %s1159_s28 }
  0x5a   : > { %v428_v9 = vld.sshfl [vmem:[#allocation1] sm:$0xff pattern:$0x75316420]  ;;  %v429_v10 = vld.sshfl [vmem:[#allocation1 + $0x8] sm:$0xff pattern:$0x75316420] }
  0x5b   : > { %432 = vst [vmem:[#allocation2 + $0x10] sm:$0x70] %v428_v9 }
  0x5c   : > { %433 = vst [vmem:[#allocation2 + $0x18] sm:$0x70] %v429_v10 }
  0x5d   : > { %434 = vst [vmem:[#allocation1] ss:$2 sm:$0xff] %v252_v0 }
  0x64   : > { %v435_v11 = vld.sshfl [vmem:[#allocation1] sm:$0xff pattern:$0x75316420]  ;;  %v436_v12 = vld.sshfl [vmem:[#allocation1 + $0x8] sm:$0xff pattern:$0x75316420] }
  0x65   : > { %439 = vrot.lane.b32.xlu0 %v435_v11, %s1160_s29  ;;  %462 = vst [vmem:[#allocation1] ss:$2 sm:$0xff] %v252_v0 }
  0x6c   : > { %v463_v13 = vld.sshfl [vmem:[#allocation1] sm:$0xff pattern:$0x75316420]  ;;  %v464_v14 = vld.sshfl [vmem:[#allocation1 + $0x8] sm:$0xff pattern:$0x75316420] }
  0x6d   : > { %441 = vrot.lane.b32.xlu0 %v436_v12, %s1160_s29  ;;  %467 = vrot.lane.b32.xlu1 %v463_v13, %s1161_s30  ;;  %490 = vst [vmem:[#allocation1] ss:$2 sm:$0xff] %v252_v0 }
  0x74   : > { %v491_v15 = vld.sshfl [vmem:[#allocation1] sm:$0xff pattern:$0x75316420]  ;;  %v492_v16 = vld.sshfl [vmem:[#allocation1 + $0x8] sm:$0xff pattern:$0x75316420] }
  0x75   : > { %469 = vrot.lane.b32.xlu1 %v464_v14, %s1161_s30  ;;  %516 = vst [vmem:[#allocation1] ss:$2 sm:$0xff] %v252_v0  ;;  %495 = vrot.lane.b32.xlu2 %v491_v15, %s1162_s5 }
  0x7c   : > { %v518_v17 = vld.sshfl [vmem:[#allocation1 + $0x8] sm:$0xff pattern:$0x75316420]  ;;  %v517_v18 = vld.sshfl [vmem:[#allocation1] sm:$0xff pattern:$0x75316420] }
  0x7d   : > { %523 = vrot.lane.b32.xlu1 %v518_v17, %s1163_s6  ;;  %521 = vrot.lane.b32.xlu0 %v517_v18, %s1163_s6 }
  0x7e   : > { %497 = vrot.lane.b32.xlu2 %v492_v16, %s1162_s5 }
  0x85   : > { %351 = vrot.lane.b32.xlu1 %v346_v4, %s1157_s24  ;;  %329 = vrot.lane.b32.xlu0 %v324_v2, %s1164_s7 }
  0x86   : > { %327 = vrot.lane.b32.xlu2 %v323_v1, %s1164_s7 }
  0xa5   : > { %v376_v27 = vpop.permute.xlu2 %375 }
  0xad   : > { %v408_v37 = vpop.permute.xlu2 %407 }
  0xb5   : > { %v1325_v21 = vpop.permute.xlu0 %349 }
  0xbd   : > { %v378_v30 = vpop.permute.xlu0 %377 }
  0xbe   : > { %v380_v31 = vsel %vm379_vm2, %v376_v27, %v378_v30  ;;  %v381_v32 = vsel %vm379_vm2, %v378_v30, %v376_v27 }
  0xbf   : > { %v388_v33 = vsel %vm382_vm4, %v381_v32, 0.0  ;;  %v389_v34 = vsel %vm1339_vm3, %v380_v31, 0.0 }
  0xc0   : > { %v392_v35 = vrot.slane %v388_v33, 2  ;;  %v393_v36 = vrot.slane %v389_v34, 2 }
  0xc2   : > { %396 = vst [vmem:[#allocation2] sm:$0xc0] %v392_v35 }
  0xc3   : > { %397 = vst [vmem:[#allocation2 + $0x8] sm:$0xc0] %v393_v36 }
  0xc4   : > { %398 = vst [vmem:[#allocation2 + $0x10] sm:$0x1] %v392_v35 }
  0xc5   : > { %399 = vst [vmem:[#allocation2 + $0x18] sm:$0x1] %v393_v36  ;;  %v406_v40 = vpop.permute.xlu1 %405 }
  0xc6   : > { %v410_v41 = vsel %vm409_vm5, %v406_v40, %v408_v37  ;;  %v411_v42 = vsel %vm409_vm5, %v408_v37, %v406_v40 }
  0xc7   : > { %v416_v43 = vsel %vm1359_vm6, %v411_v42, 0.0  ;;  %v417_v44 = vsel %vm1363_vm7, %v410_v41, 0.0  ;;  %v538_v41 = vld [vmem:[#allocation7] sm:$0xff] }
  0xc8   : > { %v420_v45 = vrot.slane %v416_v43, 7  ;;  %v421_v46 = vrot.slane %v417_v44, 7  ;;  %v539_v44 = vld [vmem:[#allocation7 + $0x8] sm:$0xff] }
  0xca   : > { %424 = vst [vmem:[#allocation2 + $0x10] sm:$0xe] %v420_v45 }
  0xcb   : > { %425 = vst [vmem:[#allocation2 + $0x18] sm:$0xe] %v421_v46 }
  0xcf   : > { %v496_v47 = vpop.permute.xlu2 %495 }
  0xd7   : > { %v440_v52 = vpop.permute.xlu0 %439 }
  0xd8   : > { %v498_v54 = vpop.permute.xlu2 %497 }
  0xd9   : > { %v500_v55 = vsel %vm1608_vm9, %v496_v47, %v498_v54  ;;  %v501_v56 = vsel %vm1608_vm9, %v498_v54, %v496_v47  ;;  %vm331_vm9 = vcmp.lt.s32.totalorder %v1323_v20, 17  ;;  %v605_v54 = vld [vmem:[#allocation9] sm:$0xff] }
  0xda   : > { %v507_v57 = vsel %vm1382_vm10, %v501_v56, 0.0  ;;  %v510_v58 = vrot.slane %v500_v55, 3  ;;  %v606_v56 = vld [vmem:[#allocation9 + $0x8] sm:$0xff] }
  0xdb   : > { %v511_v59 = vrot.slane %v507_v57, 3 }
  0xdc   : > { %514 = vst [vmem:[#allocation2 + $0x20] sm:$0xe0] %v510_v58 }
  0xdd   : > { %515 = vst [vmem:[#allocation2 + $0x28] sm:$0xe0] %v511_v59 }
  0xdf   : > { %v442_v60 = vpop.permute.xlu0 %441  ;;  %v468_v61 = vpop.permute.xlu1 %467 }
  0xe0   : > { %v444_v62 = vsel %vm443_vm11, %v440_v52, %v442_v60  ;;  %v445_v63 = vsel %vm443_vm11, %v442_v60, %v440_v52  ;;  %v328_v17 = vpop.permute.xlu2 %327 }
  0xe1   : > { %v450_v0 = vsel %vm1334_vm1, %v444_v62, 0.0  ;;  %v451_v1 = vsel %vm1339_vm3, %v445_v63, 0.0 }
  0xe2   : > { %v454_v2 = vrot.slane %v450_v0, 1  ;;  %v455_v3 = vrot.slane %v451_v1, 1 }
  0xe4   : > { %458 = vst [vmem:[#allocation2 + $0x10] sm:$0x80] %v454_v2 }
  0xe5   : > { %459 = vst [vmem:[#allocation2 + $0x18] sm:$0x80] %v455_v3 }
  0xe6   : > { %460 = vst [vmem:[#allocation2 + $0x20] sm:$0x3] %v454_v2 }
  0xe7   : > { %461 = vst [vmem:[#allocation2 + $0x28] sm:$0x3] %v455_v3  ;;  %v470_v4 = vpop.permute.xlu1 %469 }
  0xe8   : > { %v472_v5 = vsel %vm1611_vm12, %v468_v61, %v470_v4  ;;  %v473_v6 = vsel %vm1611_vm12, %v470_v4, %v468_v61  ;;  %vm607_vm12 = vcmask 130048  }
  0xe9   : > { %v480_v7 = vsel %vm1359_vm6, %v472_v5, 0.0  ;;  %v481_v8 = vsel %vm1607_vm13, %v473_v6, 0.0  ;;  %vm353_vm13 = vcmp.lt.s32.totalorder %v1323_v20, 16 }
  0xea   : > { %v484_v9 = vrot.slane %v480_v7, 6  ;;  %v485_v10 = vrot.slane %v481_v8, 6 }
  0xeb   : > { %v542_v37 = vld [vmem:[#allocation2 + $0x10] sm:$0xff] }
  0xec   : > { %488 = vst [vmem:[#allocation2 + $0x20] sm:$0x1c] %v484_v9  ;;  %v543_v40 = vld [vmem:[#allocation2 + $0x18] sm:$0xff] }
  0xed   : > { %489 = vst [vmem:[#allocation2 + $0x28] sm:$0x1c] %v485_v10 }
  0xef   : > { %v524_v11 = vpop.permute.xlu1 %523  ;;  %v522_v12 = vpop.permute.xlu0 %521 }
  0xf0   : > { %v526_v13 = vsel %vm1609_vm14, %v522_v12, %v524_v11  ;;  %v527_v14 = vsel %vm1609_vm14, %v524_v11, %v522_v12  ;;  %vm334_vm14 = vmand %vm1330_vm0, %vm1359_vm6 }
  0xf1   : > { %v534_v15 = vsel %vm1334_vm1, %v526_v13, 0.0  ;;  %v535_v16 = vsel %vm1610_vm15, %v527_v14, 0.0  ;;  %vm548_vm15 = vcmask 261120  }
  0xf2   : > { %536 = vst [vmem:[#allocation2 + $0x30] sm:$0x7] %v534_v15 }
  0xf3   : > { %537 = vst [vmem:[#allocation2 + $0x38] sm:$0x7] %v535_v16  ;;  %v544_v35 = vld [vmem:[#allocation2 + $0x20] sm:$0xff] }
  0xf4   : > { %v545_v36 = vld [vmem:[#allocation2 + $0x28] sm:$0xff] }
  0xf7   : > { %v352_v18 = vpop.permute.xlu1 %351  ;;  %v330_v19 = vpop.permute.xlu0 %329 }
  0xf8   : > { %v354_v22 = vsel %vm353_vm13, %v1325_v21, %v352_v18  ;;  %v355_v23 = vsel %vm353_vm13, %v352_v18, %v1325_v21  ;;  %v332_v24 = vsel %vm331_vm9, %v328_v17, %v330_v19  ;;  %v333_v27 = vsel %vm331_vm9, %v330_v19, %v328_v17 }
  0xf9   : > { %v360_v28 = vsel %vm1330_vm0, %v355_v23, 0.0  ;;  %v365_v30 = vrot.slane %v354_v22, 5  ;;  %v340_v31 = vsel %vm334_vm14, %v333_v27, 0.0  ;;  %v546_v32 = vld [vmem:[#allocation2 + $0x30] sm:$0xff]  ;;  %v341_v21 = vsel %vm1363_vm7, %v332_v24, 0.0 }
  0xfa   : > { %v364_v33 = vrot.slane %v360_v28, 5  ;;  %342 = vst [vmem:[#allocation2] sm:$0x7] %v340_v31  ;;  %567 = vmatpush.msra.mxu0 %v546_v32  ;;  %v547_v34 = vld [vmem:[#allocation2 + $0x38] sm:$0xff]  ;;  %v661_v19 = vstv %s660_s8 }
  0xfb   : > { %369 = vst [vmem:[#allocation2 + $0x8] sm:$0x38] %v365_v30  ;;  %590 = vmatpush.msra.mxu1 %v547_v34 }
  0xfc   : > { %368 = vst [vmem:[#allocation2] sm:$0x38] %v364_v33  ;;  %568 = vmatpush.msra.mxu0 %v544_v35 }
  0xfd   : > { %343 = vst [vmem:[#allocation2 + $0x8] sm:$0x7] %v341_v21  ;;  %591 = vmatpush.msra.mxu1 %v545_v36 }
  0xfe   : > { %569 = vmatpush.msra.mxu0 %v542_v37 }
  0xff   : > { %592 = vmatpush.msra.mxu1 %v543_v40 }
 0x103   : > { %v540_v42 = vld [vmem:[#allocation2] sm:$0xff] }
 0x104   : > { %v541_v43 = vld [vmem:[#allocation2 + $0x8] sm:$0xff]  ;;  %570 = vmatpush.msra.mxu0 %v540_v42 }
 0x105   : > { %593 = vmatpush.msra.mxu1 %v541_v43  ;;  %899 = vmatmul.msk.f32.vlgmr.msra.gmra.mxu0 %vm548_vm15, %v538_v41 }
 0x106   : > { %901 = vmatmul.msk.f32.vlgmr.msra.gmra.mxu1 %vm548_vm15, %v538_v41 }
 0x10d   : > { %900 = vmatmul.msk.f32.gmra.mxu0 %vm548_vm15, %v539_v44 }
 0x10e   : > { %902 = vmatmul.msk.f32.gmra.mxu1 %vm548_vm15, %v539_v44 }
 0x182   : > { %v572_v45 = vpop.f32.mrf.mxu0 }
 0x183   : > { %v595_v46 = vpop.f32.mrf.mxu1  ;;  %v601_v52 = vmax.f32 %v572_v45, 0.0 }
 0x184   : > { %v602_v55 = vmax.f32 %v595_v46, 0.0 }
 0x18a   : > { %v575_v47 = vpop.f32.mrf.mxu0 }
 0x18b   : > { %v598_v48 = vpop.f32.mrf.mxu1  ;;  %v603_v50 = vmax.f32 %v575_v47, 0.0 }
 0x18c   : > { %v604_v51 = vmax.f32 %v598_v48, 0.0 }
 0x18d   : > { %628 = vmatpush.msra.mxu2 %v603_v50 }
 0x18e   : > { %651 = vmatpush.msra.mxu3 %v604_v51 }
 0x18f   : > { %629 = vmatpush.msra.mxu2 %v601_v52 }
 0x190   : > { %652 = vmatpush.msra.mxu3 %v602_v55  ;;  %903 = vmatmul.msk.f32.vlgmr.msra.gmra.mxu2 %vm607_vm12, %v605_v54 }
 0x191   : > { %905 = vmatmul.msk.f32.vlgmr.msra.gmra.mxu3 %vm607_vm12, %v605_v54 }
 0x198   : > { %904 = vmatmul.msk.f32.gmra.mxu2 %vm607_vm12, %v606_v56 }
 0x199   : > { %906 = vmatmul.msk.f32.gmra.mxu3 %vm607_vm12, %v606_v56  ;;  %vm777_vm12 = vcmask 1040384  }
 0x213   : > { %v1458_v57 = vpop.f32.mrf.mxu2 }
 0x214   : > { %v1460_v58 = vpop.f32.mrf.mxu3  ;;  %662 = vrot.lane.b32.xlu1 %v1458_v57, %s1164_s7  ;;  %v674_v59 = vrot.slane %v1458_v57, 1  ;;  %v688_v61 = vrot.slane %v1458_v57, 2  ;;  %v702_v63 = vrot.slane %v1458_v57, 3  ;;  %v722_v1 = vrot.slane %v1458_v57, 5 }
 0x215   : > { %664 = vrot.lane.b32.xlu2 %v1460_v58, %s1164_s7  ;;  %v675_v60 = vrot.slane %v1460_v58, 1  ;;  %v689_v62 = vrot.slane %v1460_v58, 2  ;;  %v703_v0 = vrot.slane %v1460_v58, 3  ;;  %v723_v2 = vrot.slane %v1460_v58, 5 }
 0x216   : > { %678 = vrot.lane.b32.xlu0 %v674_v59, %s1157_s24  ;;  %v736_v3 = vrot.slane %v1458_v57, 6  ;;  %v737_v4 = vrot.slane %v1460_v58, 6  ;;  %v750_v5 = vrot.slane %v1458_v57, 7  ;;  %v751_v6 = vrot.slane %v1460_v58, 7 }
 0x217   : > { %v717_v25 = vrot.slane %v1460_v58, 4  ;;  %v716_v59 = vrot.slane %v1458_v57, 4 }
 0x21b   : > { %v634_v7 = vpop.f32.mrf.mxu2 }
 0x21c   : > { %680 = vrot.lane.b32.xlu1 %v675_v60, %s1157_s24  ;;  %v657_v8 = vpop.f32.mrf.mxu3  ;;  %s1095_s24 = sshra.s32 %s797_s26, 4  ;;  %s1096_s24 = int_to_ptr.hbm [resolvable:$true] %s1095_s24 }
 0x21d   : > { %692 = vrot.lane.b32.xlu2 %v688_v61, %s1158_s14  ;;  %p1102_p12 = scmp.lt.s32.totalorder %s1096_s24, %s1606_s4 }
 0x21e   : > { %694 = vrot.lane.b32.xlu0 %v689_v62, %s1158_s14  ;;  %s1097_s14 = scalar_lea.hbm %s1096_s24, 2 }
 0x21f   : > { %p1098_p1 = scmp.ne.s32.totalorder %s1096_s24, %s1097_s14 }
 0x221   : > { %p1099_p3 = pnand %p1098_p1, %p1264_p4 }
 0x223   : > { %p1100_p5 = pneg %p1099_p3 }
 0x224   : > { %706 = vrot.lane.b32.xlu1 %v702_v63, %s1159_s28 }
 0x225   : > { %708 = vrot.lane.b32.xlu2 %v703_v0, %s1159_s28 }
 0x226   : > { %726 = vrot.lane.b32.xlu0 %v722_v1, %s1160_s29 }
 0x22c   : > { %728 = vrot.lane.b32.xlu1 %v723_v2, %s1160_s29 }
 0x22d   : > { %740 = vrot.lane.b32.xlu2 %v736_v3, %s1161_s30 }
 0x22e   : > { %742 = vrot.lane.b32.xlu0 %v737_v4, %s1161_s30  ;;  %s1101_s30 = scalar_lea.hbm %s1606_s4, 4 }
 0x22f   : > { %p1103_p7 = scmp.lt.s32.totalorder %s1101_s30, %s1097_s14 }
 0x231   : > { %p1104_p8 = por %p1103_p7, %p1102_p12 }
 0x233   : > { %p1105_p9 = pnand %p1104_p8, %p1100_p5 }
 0x234   : > { %754 = vrot.lane.b32.xlu1 %v750_v5, %s1162_s5 }
 0x235   : > { %756 = vrot.lane.b32.xlu2 %v751_v6, %s1162_s5 }
 0x236   : > { %764 = vrot.lane.b32.xlu0 %v634_v7, %s1163_s6 }
 0x23c   : > { %766 = vrot.lane.b32.xlu1 %v657_v8, %s1163_s6 }
 0x26f   : > { %v665_v9 = vpop.permute.xlu2 %664 }
 0x277   : > { %v693_v12 = vpop.permute.xlu2 %692 }
 0x27f   : > { %v709_v15 = vpop.permute.xlu2 %708 }
 0x286   : > { %v663_v10 = vpop.permute.xlu1 %662 }
 0x287   : > { %v666_v16 = vsel %vm331_vm9, %v663_v10, %v665_v9  ;;  %v667_v18 = vsel %vm331_vm9, %v665_v9, %v663_v10  ;;  %v741_v36 = vpop.permute.xlu2 %740 }
 0x288   : > { %v679_v11 = vpop.permute.xlu0 %678  ;;  %v669_v22 = vsel %vm1363_vm7, %v666_v16, 0.0  ;;  %v668_v24 = vsel %vm334_vm14, %v667_v18, 0.0 }
 0x289   : > { %v671_v30 = vadd.f32 %v669_v22, %v661_v19  ;;  %v670_v33 = vadd.f32 %v668_v24, %v661_v19 }
 0x28e   : > { %v681_v13 = vpop.permute.xlu1 %680 }
 0x28f   : > { %v683_v23 = vsel %vm353_vm13, %v681_v13, %v679_v11  ;;  %v682_v27 = vsel %vm353_vm13, %v679_v11, %v681_v13  ;;  %v757_v62 = vpop.permute.xlu2 %756 }
 0x290   : > { %v695_v14 = vpop.permute.xlu0 %694  ;;  %v684_v32 = vsel %vm1330_vm0, %v683_v23, 0.0  ;;  %v687_v21 = vadd.f32 %v682_v27, %v671_v30  ;;  %vm1632_vm0 = vcmp.lt.s32.totalorder %v1323_v20, 113 }
 0x291   : > { %v696_v31 = vsel %vm379_vm2, %v693_v12, %v695_v14  ;;  %v697_v34 = vsel %vm379_vm2, %v695_v14, %v693_v12  ;;  %v686_v41 = vadd.f32 %v684_v32, %v670_v33  ;;  %vm1633_vm2 = vmmov %vm1632_vm0 }
 0x292   : > { %v699_v37 = vsel %vm1339_vm3, %v696_v31, 0.0  ;;  %v698_v43 = vsel %vm382_vm4, %v697_v34, 0.0  ;;  %vm1634_vm4 = vcmp.lt.s32.totalorder %v1323_v20, 112 }
 0x293   : > { %v701_v45 = vadd.f32 %v699_v37, %v687_v21  ;;  %v700_v47 = vadd.f32 %v698_v43, %v686_v41  ;;  %vm1636_vm9 = vmmov %vm1634_vm4 }
 0x296   : > { %v707_v17 = vpop.permute.xlu1 %706 }
 0x297   : > { %v710_v35 = vsel %vm409_vm5, %v707_v17, %v709_v15  ;;  %v711_v42 = vsel %vm409_vm5, %v709_v15, %v707_v17  ;;  %vm1635_vm5 = vmand %vm1382_vm10, %vm1363_vm7 }
 0x298   : > { %v727_v28 = vpop.permute.xlu0 %726  ;;  %v713_v44 = vsel %vm1363_vm7, %v710_v35, 0.0  ;;  %v712_v46 = vsel %vm1359_vm6, %v711_v42, 0.0  ;;  %vm1637_vm7 = vcmp.lt.s32.totalorder %v1323_v20, 111 }
 0x299   : > { %v715_v48 = vadd.f32 %v713_v44, %v701_v45  ;;  %v714_v52 = vadd.f32 %v712_v46, %v700_v47 }
 0x29b   : > { %v721_v60 = vadd.f32 %v717_v25, %v715_v48  ;;  %v720_v0 = vadd.f32 %v716_v59, %v714_v52 }
 0x29e   : > { %v729_v40 = vpop.permute.xlu1 %728 }
 0x29f   : > { %v731_v50 = vsel %vm443_vm11, %v729_v40, %v727_v28  ;;  %v730_v54 = vsel %vm443_vm11, %v727_v28, %v729_v40  ;;  %vm1639_vm11 = vmand %vm1382_vm10, %vm1339_vm3 }
 0x2a0   : > { %v743_v51 = vpop.permute.xlu0 %742  ;;  %v733_v55 = vsel %vm1339_vm3, %v731_v50, 0.0  ;;  %v732_v63 = vsel %vm1334_vm1, %v730_v54, 0.0 }
 0x2a1   : > { %v745_v61 = vsel %vm1632_vm0, %v743_v51, %v741_v36  ;;  %v735_v58 = vadd.f32 %v733_v55, %v721_v60  ;;  %v744_v1 = vsel %vm1633_vm2, %v741_v36, %v743_v51  ;;  %v734_v3 = vadd.f32 %v732_v63, %v720_v0 }
 0x2a2   : > { %v747_v57 = vsel %vm1635_vm5, %v745_v61, 0.0  ;;  %v746_v4 = vsel %vm1359_vm6, %v744_v1, 0.0  ;;  %vm1638_vm6 = vmmov %vm1637_vm7 }
 0x2a3   : > { %v749_v7 = vadd.f32 %v747_v57, %v735_v58  ;;  %v748_v39 = vadd.f32 %v746_v4, %v734_v3 }
 0x2a6   : > { %v755_v56 = vpop.permute.xlu1 %754 }
 0x2a7   : > { %v759_v2 = vsel %vm1634_vm4, %v757_v62, %v755_v56  ;;  %v758_v8 = vsel %vm1636_vm9, %v755_v56, %v757_v62 }
 0x2a8   : > { %v761_v5 = vsel %vm1382_vm10, %v759_v2, 0.0  ;;  %v765_v6 = vpop.permute.xlu0 %764  ;;  %v762_v14 = vadd.f32 %v758_v8, %v748_v39 }
 0x2a9   : > { %v763_v10 = vadd.f32 %v761_v5, %v749_v7 }
 0x2ae   : > { %v767_v9 = vpop.permute.xlu1 %766 }
 0x2af   : > { %v768_v11 = vsel %vm1637_vm7, %v765_v6, %v767_v9  ;;  %v769_v38 = vsel %vm1638_vm6, %v767_v9, %v765_v6 }
 0x2b0   : > { %v770_v12 = vsel %vm1334_vm1, %v768_v11, 0.0  ;;  %v771_v13 = vsel %vm1639_vm11, %v769_v38, 0.0 }
 0x2b1   : > { %v773_v15 = vadd.f32 %v771_v13, %v763_v10  ;;  %v772_v16 = vadd.f32 %v770_v12, %v762_v14 }
 0x2b3   : > { %v776_v20 = vrot.slane %v773_v15, 7 }
 0x2b5   : > { %v778_v17 = vsel %vm777_vm12, %v772_v16, %v776_v20 }
 0x2b6   : > { %780 = vst.msk [vmem:[%s249_s23] sm:$0x3] %vm1375_vm8, %v778_v17 }
 0x2b7   : > { %1108 = shalt.err (!%p1105_p9)
}
 0x2b8   : > { %922 = dma.vmem_to_hbm [thread:$0]  (%p1264_p4), %s795_s25, 32, %s797_s26, %s782_s27  }
 0x2b9 PF: > { %s808_s15 = sand.u32 1, %s1139_s17   ;;  %p1640_p10 = scmp.ge.s32.totalorder %s1151_s20, 2 }
 0x2ba   : > { %s809_s7 = scalar_lea.sflag [#allocation6], %s808_s15 }
 0x2bb   : > { %p936_p13 = pnand %p1640_p10, %p1268_p6 }
 0x2bd   : > { %p937_p11 = pneg %p936_p13 }
 0x2bf   : > { %1134 = dma.done.wait (%p937_p11), %s809_s7, 32  }
 0x2c0   : > { %1136 = vsyncadd (%p937_p11), %s809_s7, 4294967264  ;;  %p19_p0 = scmp.ge.s32.totalorder %s1238_s9, 4   ;;  %s1641_s17 = smov %s1143_s18 }
 0x2c1   : > { %s1642_s18 = smov %s1147_s19  ;;  %s1643_s19 = smov %s1249_s12 }
 0x2c2   : > { %s1644_s20 = smov %s1238_s9  ;;  %21 = sbr.rel (!%p19_p0) target bundleno = 8 (0x8), region = 91 }
 0x2c7   :  { %815 = vsyncpa [#allocation5], 1 }
 0x2c8   :  { %817 = vsyncpa [#allocation5 + $0x1], 1 }
 0x2c9   :  { %818 = vsyncpa [#allocation8], 1 }
 0x2ca   :  { %819 = vsyncpa [#allocation6], 1 }
 0x2cb   :  { %821 = vsyncpa [#allocation6 + $0x1], 1 }

</bundles_post_ra>
